<compile_context>
chip_gen: v6e
topology: v6e:2x2x1
jax: 0.10.0
libtpu: 0.0.40
codegen_flags: <defaults>
</compile_context>

<pallas_src>
import functools
import math

import jax
import jax.numpy as jnp
from jax.experimental import pallas as pl
from jax.experimental.pallas import tpu as pltpu

_LANE = 128  # lane (last-dim) width


def _round_up(n, m):
    return ((n + m - 1) // m) * m


def _fcn_fused_kernel(x_ref, w_ref, b_ref, o_ref, *, num_layers, n_input):
    """Whole FCN forward in one kernel invocation.

    x_ref: (M, n_input)  f32   unpadded input
    w_ref: (L, D, D)     bf16  stacked zero-padded weights (y = x @ W layout)
    b_ref: (L, 1, D)     f32   stacked zero-padded biases
    o_ref: (M, D)        f32   lane-dense output (padded lanes are exactly 0)
    """
    h = x_ref[...]                                   # f32 activations
    for i in range(num_layers):                      # tiny static unroll
        w = w_ref[i]                                 # (D, D) bf16
        if i == 0:
            # First layer contracts over the true input width; remaining rows
            # of the stacked slab are zero anyway.  MXU pads K internally.
            w = w[:n_input, :]
        b = b_ref[i]                                 # (1, D) f32, broadcasts over rows
        # bf16 MXU inputs, f32 accumulate; bias add / tanh stay f32
        # (v5e has no bf16 VPU/EUP).
        h = jnp.dot(h.astype(w.dtype), w, preferred_element_type=jnp.float32) + b
        if i != num_layers - 1:
            h = jnp.tanh(h)                          # serial dep -> on critical path; fine at toy sizes
    o_ref[...] = h.astype(o_ref.dtype)


def init_fcn_params(key, n_input, n_output, n_hidden, n_layers, dtype=jnp.float32):
    """Init mirroring the PyTorch FCN layer structure (N_LAYERS+1 Linear, N_LAYERS Tanh)."""
    dims = [n_input] + [n_hidden] * n_layers + [n_output]
    params = []
    for din, dout in zip(dims[:-1], dims[1:]):
        key, kw, kb = jax.random.split(key, 3)
        bound = 1.0 / math.sqrt(din)                 # PyTorch nn.Linear-style uniform bound
        w = jax.random.uniform(kw, (din, dout), dtype, -bound, bound)   # stored as (in, out)
        b = jax.random.uniform(kb, (1, dout), dtype, -bound, bound)
        params.append((w, b))
    return params


def pack_fcn_params(params, matmul_dtype=jnp.bfloat16):
    """One-time packing: zero-pad every layer to a common lane-dense size D and stack.

    Returns W: (L, D, D) in `matmul_dtype`, B: (L, 1, D) in f32.  Exactly 3
    operands (x, W, B) then reach the kernel -> 3 input DMAs total.
    """
    dims = [params[0][0].shape[0]] + [w.shape[1] for (w, _) in params]
    D = max(_round_up(d, _LANE) for d in dims)
    L = len(params)
    W = jnp.zeros((L, D, D), matmul_dtype)
    B = jnp.zeros((L, 1, D), jnp.float32)
    for i, (w, b) in enumerate(params):
        din, dout = w.shape
        W = W.at[i, :din, :dout].set(w.astype(matmul_dtype))
        B = B.at[i, :, :dout].set(b.astype(jnp.float32))
    return W, B


@functools.partial(jax.jit, static_argnames=("n_output",))
def fcn_forward(x, w_stack, b_stack, n_output):
    """Single fused, grid-less pallas_call for the whole FCN forward."""
    M, K = x.shape
    L, D, _ = w_stack.shape

    # Advisory cost estimate for XLA's scheduler around the tiny custom call.
    flops = 2 * M * K * D + 2 * M * D * D * (L - 1)
    transcendentals = M * D * (L - 1)                      # one tanh per hidden elem
    bytes_accessed = (x.size * x.dtype.itemsize
                      + w_stack.size * w_stack.dtype.itemsize
                      + b_stack.size * b_stack.dtype.itemsize
                      + M * D * 4)

    out = pl.pallas_call(
        functools.partial(_fcn_fused_kernel, num_layers=L, n_input=K),
        out_shape=jax.ShapeDtypeStruct((M, D), jnp.float32),
        in_specs=[
            pl.BlockSpec(memory_space=pltpu.MemorySpace.VMEM),  # x, whole array
            pl.BlockSpec(memory_space=pltpu.MemorySpace.VMEM),  # stacked weights
            pl.BlockSpec(memory_space=pltpu.MemorySpace.VMEM),  # stacked biases
        ],
        out_specs=pl.BlockSpec(memory_space=pltpu.MemorySpace.VMEM),
        cost_estimate=pl.CostEstimate(
            flops=flops,
            transcendentals=transcendentals,
            bytes_accessed=bytes_accessed,
        ),
    )(x, w_stack, b_stack)

    # Strip output-feature padding (batch dim was never padded).
    return out[:, :n_output]


def fcn_reference(x, params, matmul_dtype=jnp.float32):
    """Pure-JAX reference matching the PyTorch FCN forward.

    With matmul_dtype=bf16 it mirrors the kernel's numerics exactly
    (bf16 MXU inputs, f32 accumulate, f32 bias/tanh).
    """
    h = x
    for i, (w, b) in enumerate(params):
        h = jnp.dot(h.astype(matmul_dtype), w.astype(matmul_dtype),
                    preferred_element_type=jnp.float32) + b
        if i != len(params) - 1:
            h = jnp.tanh(h)
    return h


if __name__ == "__main__":
    N_INPUT, N_OUTPUT, N_HIDDEN, N_LAYERS = 4, 2, 32, 3
    BATCH = 8

    key = jax.random.PRNGKey(0)
    key, kx = jax.random.split(key)
    x = jax.random.normal(kx, (BATCH, N_INPUT), jnp.float32)

    params = init_fcn_params(key, N_INPUT, N_OUTPUT, N_HIDDEN, N_LAYERS)
    w_stack, b_stack = pack_fcn_params(params)     # one-time, outside the forward

    out = fcn_forward(x, w_stack, b_stack, n_output=N_OUTPUT)
    out = jax.block_until_ready(out)
    assert out.shape == (BATCH, N_OUTPUT), out.shape

    # Tight check vs a reference using the same bf16-matmul numerics.
    ref_bf16 = fcn_reference(x, params, matmul_dtype=jnp.bfloat16)
    assert jnp.allclose(out, ref_bf16, atol=2e-3, rtol=2e-3), (
        f"bf16-path max abs err = {jnp.max(jnp.abs(out - ref_bf16))}"
    )
    # Loose check vs the exact f32 reference (bf16 MXU inputs in the kernel).
    ref_f32 = fcn_reference(x, params, matmul_dtype=jnp.float32)
    assert jnp.allclose(out, ref_f32, atol=1e-1, rtol=1e-1), (
        f"f32-ref max abs err = {jnp.max(jnp.abs(out - ref_f32))}"
    )

    print("KERNEL_OK")
</pallas_src>

<mosaic_0001>
module attributes {stable_mosaic.version = 11 : i64} {
  func.func @_fcn_fused_kernel(%arg0: memref<8x4xf32, #tpu.memory_space<vmem>>, %arg1: memref<4x128x128xbf16, #tpu.memory_space<vmem>>, %arg2: memref<4x1x128xf32, #tpu.memory_space<vmem>>, %arg3: memref<8x128xf32, #tpu.memory_space<vmem>>) attributes {dimension_semantics = [], scalar_prefetch = 0 : i64, scratch_operands = 0 : i64, tpu.core_type = #tpu.core_type<tc>} {
    %c0 = arith.constant 0 : index
    %c0_0 = arith.constant 0 : index
    %0 = vector.load %arg0[%c0, %c0_0] : memref<8x4xf32, #tpu.memory_space<vmem>>, vector<8x4xf32>
    %c0_1 = arith.constant 0 : index
    %c0_2 = arith.constant 0 : index
    %c0_3 = arith.constant 0 : index
    %1 = vector.load %arg1[%c0_1, %c0_2, %c0_3] : memref<4x128x128xbf16, #tpu.memory_space<vmem>>, vector<1x128x128xbf16>
    %2 = vector.shape_cast %1 : vector<1x128x128xbf16> to vector<128x128xbf16>
    %3 = vector.extract_strided_slice %2 {offsets = [0, 0], sizes = [4, 128], strides = [1, 1]} : vector<128x128xbf16> to vector<4x128xbf16>
    %c0_4 = arith.constant 0 : index
    %c0_5 = arith.constant 0 : index
    %c0_6 = arith.constant 0 : index
    %4 = vector.load %arg2[%c0_4, %c0_5, %c0_6] : memref<4x1x128xf32, #tpu.memory_space<vmem>>, vector<1x1x128xf32>
    %5 = vector.shape_cast %4 : vector<1x1x128xf32> to vector<1x128xf32>
    %6 = arith.truncf %0 : vector<8x4xf32> to vector<8x4xbf16>
    %cst = arith.constant dense<0.000000e+00> : vector<8x128xf32>
    %7 = tpu.matmul %6, %3, %cst {dimension_numbers = #tpu.dot_dimension_numbers<[1], [0], [0], [1], [0, 0, 1, 1], [], []>} : vector<8x4xbf16>, vector<4x128xbf16>, vector<8x128xf32> -> vector<8x128xf32>
    %8 = vector.broadcast %5 : vector<1x128xf32> to vector<8x128xf32>
    %9 = arith.addf %7, %8 : vector<8x128xf32>
    %10 = math.tanh %9 : vector<8x128xf32>
    %c1 = arith.constant 1 : index
    %c0_7 = arith.constant 0 : index
    %c0_8 = arith.constant 0 : index
    %11 = vector.load %arg1[%c1, %c0_7, %c0_8] : memref<4x128x128xbf16, #tpu.memory_space<vmem>>, vector<1x128x128xbf16>
    %12 = vector.shape_cast %11 : vector<1x128x128xbf16> to vector<128x128xbf16>
    %c1_9 = arith.constant 1 : index
    %c0_10 = arith.constant 0 : index
    %c0_11 = arith.constant 0 : index
    %13 = vector.load %arg2[%c1_9, %c0_10, %c0_11] : memref<4x1x128xf32, #tpu.memory_space<vmem>>, vector<1x1x128xf32>
    %14 = vector.shape_cast %13 : vector<1x1x128xf32> to vector<1x128xf32>
    %15 = arith.truncf %10 : vector<8x128xf32> to vector<8x128xbf16>
    %cst_12 = arith.constant dense<0.000000e+00> : vector<8x128xf32>
    %16 = tpu.matmul %15, %12, %cst_12 {dimension_numbers = #tpu.dot_dimension_numbers<[1], [0], [0], [1], [0, 0, 1, 1], [], []>} : vector<8x128xbf16>, vector<128x128xbf16>, vector<8x128xf32> -> vector<8x128xf32>
    %17 = vector.broadcast %14 : vector<1x128xf32> to vector<8x128xf32>
    %18 = arith.addf %16, %17 : vector<8x128xf32>
    %19 = math.tanh %18 : vector<8x128xf32>
    %c2 = arith.constant 2 : index
    %c0_13 = arith.constant 0 : index
    %c0_14 = arith.constant 0 : index
    %20 = vector.load %arg1[%c2, %c0_13, %c0_14] : memref<4x128x128xbf16, #tpu.memory_space<vmem>>, vector<1x128x128xbf16>
    %21 = vector.shape_cast %20 : vector<1x128x128xbf16> to vector<128x128xbf16>
    %c2_15 = arith.constant 2 : index
    %c0_16 = arith.constant 0 : index
    %c0_17 = arith.constant 0 : index
    %22 = vector.load %arg2[%c2_15, %c0_16, %c0_17] : memref<4x1x128xf32, #tpu.memory_space<vmem>>, vector<1x1x128xf32>
    %23 = vector.shape_cast %22 : vector<1x1x128xf32> to vector<1x128xf32>
    %24 = arith.truncf %19 : vector<8x128xf32> to vector<8x128xbf16>
    %cst_18 = arith.constant dense<0.000000e+00> : vector<8x128xf32>
    %25 = tpu.matmul %24, %21, %cst_18 {dimension_numbers = #tpu.dot_dimension_numbers<[1], [0], [0], [1], [0, 0, 1, 1], [], []>} : vector<8x128xbf16>, vector<128x128xbf16>, vector<8x128xf32> -> vector<8x128xf32>
    %26 = vector.broadcast %23 : vector<1x128xf32> to vector<8x128xf32>
    %27 = arith.addf %25, %26 : vector<8x128xf32>
    %28 = math.tanh %27 : vector<8x128xf32>
    %c3 = arith.constant 3 : index
    %c0_19 = arith.constant 0 : index
    %c0_20 = arith.constant 0 : index
    %29 = vector.load %arg1[%c3, %c0_19, %c0_20] : memref<4x128x128xbf16, #tpu.memory_space<vmem>>, vector<1x128x128xbf16>
    %30 = vector.shape_cast %29 : vector<1x128x128xbf16> to vector<128x128xbf16>
    %c3_21 = arith.constant 3 : index
    %c0_22 = arith.constant 0 : index
    %c0_23 = arith.constant 0 : index
    %31 = vector.load %arg2[%c3_21, %c0_22, %c0_23] : memref<4x1x128xf32, #tpu.memory_space<vmem>>, vector<1x1x128xf32>
    %32 = vector.shape_cast %31 : vector<1x1x128xf32> to vector<1x128xf32>
    %33 = arith.truncf %28 : vector<8x128xf32> to vector<8x128xbf16>
    %cst_24 = arith.constant dense<0.000000e+00> : vector<8x128xf32>
    %34 = tpu.matmul %33, %30, %cst_24 {dimension_numbers = #tpu.dot_dimension_numbers<[1], [0], [0], [1], [0, 0, 1, 1], [], []>} : vector<8x128xbf16>, vector<128x128xbf16>, vector<8x128xf32> -> vector<8x128xf32>
    %35 = vector.broadcast %32 : vector<1x128xf32> to vector<8x128xf32>
    %36 = arith.addf %34, %35 : vector<8x128xf32>
    %c0_25 = arith.constant 0 : index
    %c0_26 = arith.constant 0 : index
    %37 = vector.load %arg3[%c0_25, %c0_26] : memref<8x128xf32, #tpu.memory_space<vmem>>, vector<8x128xf32>
    tpu.vector_store %arg3[%c0_25, %c0_26], %36 {strides = array<i32>} : memref<8x128xf32, #tpu.memory_space<vmem>>, vector<8x128xf32>,
    return
  }
}

</mosaic_0001>

<bundles_post_ra>
// kernel: fcn_forward.1
= control target key start
LH: loop header
LB: loop body
LE: loop exit
PB: predicated region body
PF: predicated region fallthrough
CT: control target
= control target key end

     0   :  { %8 = vsyncpa [#allocation3], 0  ;;  %s622_s12 = smov [#allocation2]   ;;  %s701_s0 = inlined_call_operand.vmem [shape: f32[8,4], index: 0, kind: input, shape index: {}]   ;;  %s702_s1 = inlined_call_operand.hbm [shape: bf16[4,128,128], index: 1, kind: input, shape index: {}]   ;;  %s703_s2 = inlined_call_operand.vmem [shape: f32[4,1,128], index: 2, kind: input, shape index: {}]   ;;  %s704_s3 = inlined_call_operand.vmem [shape: f32[8,128], index: 3, kind: output, shape index: {}]  }
   0x1   :  { %s16_s13 = sshll.u32 %s622_s12, 4  ;;  %s17_s13 = int_to_ptr.vmem [resolvable:$true] %s16_s13 }
   0x2   :  { %s608_s14 = scalar_lea.vmem %s17_s13, 4096  ;;  %p613_p1 = scmp.lt.s32.totalorder %s17_s13, %s17_s13 }
   0x3   :  { %p609_p0 = scmp.ne.s32.totalorder %s17_s13, %s608_s14  ;;  %p614_p2 = scmp.lt.s32.totalorder %s608_s14, %s608_s14 }
   0x5   :  { %p615_p3 = por %p614_p2, %p613_p1 }
   0x7   :  { %p616_p4 = pnand %p615_p3, %p609_p0 }
   0x9   :  { %619 = shalt.err (!%p616_p4)
}
   0xa   :  { %s623_s15 = smov 64   ;;  %s624_s16 = smov 4  }
   0xb   :  { %22 = dma.hbm_to_vmem [thread:$0]  %s702_s1, 4096, %s17_s13, [#allocation3], %s623_s15, %s623_s15, %s624_s16  }
   0xc   :  { %620 = dma.done.wait [#allocation3], 4096  }
   0xd   :  { %621 = vsyncadd [#allocation3], 4294963200  ;;  %v625_v0 = vmov 0.0   ;;  %vm626_vm0 = vmmov 0   ;;  %vm43_vm1 = vcmask 1041408   ;;  %v29_v2 = vld [vmem:[%s701_s0] sm:$0xff] }
   0xe   :  { %499 = vmatprep.subr.bf16.mxu0 %v625_v0  ;;  %501 = vmatprep.mubr.msk.bf16.mxu0 %vm626_vm0, %v625_v0  ;;  %v30_v1 = vld [vmem:[#allocation2] sm:$0xf]  ;;  %v32_v4 = vpack.c.bf16 %v29_v2, %v29_v2  ;;  %v570_v5 = vld [vmem:[#allocation2 + $0x78] sm:$0xff]   ;;  %vm39_vm2 = vcmask 31744   ;;  %v571_v6 = vld [vmem:[#allocation2 + $0x70] sm:$0xff]  }
   0xf   :  { %505 = vmatprep.subr.bf16.mxu1 %v625_v0  ;;  %521 = vmatprep.mubr.msk.bf16.mxu1 %vm626_vm0, %v625_v0  ;;  %v45_v3 = vsel %vm43_vm1, %v30_v1, 0  ;;  %v572_v7 = vld [vmem:[#allocation2 + $0x68] sm:$0xff]   ;;  %v573_v8 = vld [vmem:[#allocation2 + $0x60] sm:$0xff]   ;;  %v574_v9 = vld [vmem:[#allocation2 + $0x58] sm:$0xff]  }
  0x10   :  { %500 = vmatpush3.bf16.msra.mxu0 %v45_v3  ;;  %506 = vmatpush3.bf16.msra.mxu1 %v570_v5  ;;  %v575_v10 = vld [vmem:[#allocation2 + $0x50] sm:$0xff]   ;;  %v576_v11 = vld [vmem:[#allocation2 + $0x48] sm:$0xff]   ;;  %v577_v12 = vld [vmem:[#allocation2 + $0x40] sm:$0xff]  }
  0x11   :  { %525 = vmatprep.subr.bf16.mxu0 %v625_v0  ;;  %507 = vmatprep.subr.bf16.mxu1 %v625_v0  ;;  %v578_v13 = vld [vmem:[#allocation2 + $0xb8] sm:$0xff]   ;;  %v579_v14 = vld [vmem:[#allocation2 + $0xb0] sm:$0xff]   ;;  %v580_v15 = vld [vmem:[#allocation2 + $0xa8] sm:$0xff]  }
  0x12   :  { %v438_v16 = vld [vmem:[%s703_s2] ss:$0 sm:$0xff]  ;;  %v582_v25 = vld [vmem:[#allocation2 + $0x98] sm:$0xff]   ;;  %v583_v26 = vld [vmem:[#allocation2 + $0x90] sm:$0xff]  }
  0x13   :  { %502 = vmatmul.mubr.msk.bf16.vlgmr.msra.gmra.mxu0 %vm39_vm2, %v32_v4  ;;  %v581_v24 = vld [vmem:[#allocation2 + $0xa0] sm:$0xff]   ;;  %v584_v27 = vld [vmem:[#allocation2 + $0x88] sm:$0xff]   ;;  %v586_v29 = vld [vmem:[#allocation2 + $0xf8] sm:$0xff]  }
  0x14   :  { %541 = vmatprep.mubr.msk.bf16.mxu0 %vm626_vm0, %v625_v0  ;;  %508 = vmatpush3.bf16.msra.mxu1 %v571_v6  ;;  %v585_v28 = vld [vmem:[#allocation2 + $0x80] sm:$0xff]   ;;  %v587_v30 = vld [vmem:[#allocation2 + $0xf0] sm:$0xff]   ;;  %v588_v31 = vld [vmem:[#allocation2 + $0xe8] sm:$0xff]  }
  0x15   :  { %509 = vmatprep.subr.bf16.mxu1 %v625_v0  ;;  %526 = vmatpush3.bf16.msra.mxu0 %v578_v13  ;;  %v441_v32 = vld [vmem:[%s703_s2 + $0x1] ss:$0 sm:$0xff]  ;;  %v590_v41 = vld [vmem:[#allocation2 + $0xd8] sm:$0xff]   ;;  %v591_v42 = vld [vmem:[#allocation2 + $0xd0] sm:$0xff]  }
  0x16   :  { %527 = vmatprep.subr.bf16.mxu0 %v625_v0  ;;  %v589_v40 = vld [vmem:[#allocation2 + $0xe0] sm:$0xff]   ;;  %v592_v43 = vld [vmem:[#allocation2 + $0xc8] sm:$0xff]  }
  0x17   :  { %v593_v44 = vld [vmem:[#allocation2 + $0xc0] sm:$0xff]  }
  0x18   :  { %510 = vmatpush3.bf16.msra.mxu1 %v572_v7  ;;  %v451_v45 = vld [vmem:[%s703_s2 + $0x2] ss:$0 sm:$0xff]  ;;  %v461_v53 = vld [vmem:[%s703_s2 + $0x3] ss:$0 sm:$0xff] }
  0x19   :  { %511 = vmatprep.subr.bf16.mxu1 %v625_v0  ;;  %528 = vmatpush3.bf16.msra.mxu0 %v579_v14 }
  0x1a   :  { %529 = vmatprep.subr.bf16.mxu0 %v625_v0 }
  0x1c   :  { %512 = vmatpush3.bf16.msra.mxu1 %v573_v8 }
  0x1d   :  { %513 = vmatprep.subr.bf16.mxu1 %v625_v0  ;;  %530 = vmatpush3.bf16.msra.mxu0 %v580_v15 }
  0x1e   :  { %531 = vmatprep.subr.bf16.mxu0 %v625_v0 }
  0x20   :  { %514 = vmatpush3.bf16.msra.mxu1 %v574_v9 }
  0x21   :  { %515 = vmatprep.subr.bf16.mxu1 %v625_v0  ;;  %532 = vmatpush3.bf16.msra.mxu0 %v581_v24 }
  0x22   :  { %533 = vmatprep.subr.bf16.mxu0 %v625_v0 }
  0x24   :  { %516 = vmatpush3.bf16.msra.mxu1 %v575_v10 }
  0x25   :  { %517 = vmatprep.subr.bf16.mxu1 %v625_v0  ;;  %534 = vmatpush3.bf16.msra.mxu0 %v582_v25 }
  0x26   :  { %535 = vmatprep.subr.bf16.mxu0 %v625_v0 }
  0x28   :  { %518 = vmatpush3.bf16.msra.mxu1 %v576_v11 }
  0x29   :  { %519 = vmatprep.subr.bf16.mxu1 %v625_v0  ;;  %536 = vmatpush3.bf16.msra.mxu0 %v583_v26 }
  0x2a   :  { %537 = vmatprep.subr.bf16.mxu0 %v625_v0 }
  0x2c   :  { %520 = vmatpush3.bf16.msra.mxu1 %v577_v12 }
  0x2d   :  { %545 = vmatprep.subr.bf16.mxu1 %v625_v0  ;;  %538 = vmatpush3.bf16.msra.mxu0 %v584_v27 }
  0x2e   :  { %539 = vmatprep.subr.bf16.mxu0 %v625_v0 }
  0x31   :  { %540 = vmatpush3.bf16.msra.mxu0 %v585_v28 }
  0xd3   :  { %v81_v17 = vpop.f32.mrf.mxu0 }
  0xd4   :  { %v82_v18 = vadd.f32 %v438_v16, %v81_v17 }
  0xd5   :  { %v503_v19 = vpop.f32.mrf.mxu0 }
  0xd6   :  { %594 = vtanh.f32 %v82_v18 }
  0xd7   :  { %v84_v20 = vpop.f32.mrf.mxu0 }
  0xd9   :  { %v504_v21 = vpop.f32.mrf.mxu0 }
  0xe3   :  { %v595_v22 = vpop.eup %594 }
  0xe4   :  { %v107_v23 = vpack.c.bf16 %v595_v22, %v595_v22 }
  0xe6   :  { %522 = vmatmul.mubr.bf16.vlgmr.msra.gmra.mxu1 %v107_v23 }
  0xe7   :  { %561 = vmatprep.mubr.msk.bf16.mxu1 %vm626_vm0, %v625_v0  ;;  %546 = vmatpush3.bf16.msra.mxu1 %v586_v29 }
  0xe8   :  { %547 = vmatprep.subr.bf16.mxu1 %v625_v0 }
  0xeb   :  { %548 = vmatpush3.bf16.msra.mxu1 %v587_v30 }
  0xec   :  { %549 = vmatprep.subr.bf16.mxu1 %v625_v0 }
  0xef   :  { %550 = vmatpush3.bf16.msra.mxu1 %v588_v31 }
  0xf0   :  { %551 = vmatprep.subr.bf16.mxu1 %v625_v0 }
  0xf3   :  { %552 = vmatpush3.bf16.msra.mxu1 %v589_v40 }
  0xf4   :  { %553 = vmatprep.subr.bf16.mxu1 %v625_v0 }
  0xf7   :  { %554 = vmatpush3.bf16.msra.mxu1 %v590_v41 }
  0xf8   :  { %555 = vmatprep.subr.bf16.mxu1 %v625_v0 }
  0xfb   :  { %556 = vmatpush3.bf16.msra.mxu1 %v591_v42 }
  0xfc   :  { %557 = vmatprep.subr.bf16.mxu1 %v625_v0 }
  0xff   :  { %558 = vmatpush3.bf16.msra.mxu1 %v592_v43 }
 0x100   :  { %559 = vmatprep.subr.bf16.mxu1 %v625_v0 }
 0x103   :  { %560 = vmatpush3.bf16.msra.mxu1 %v593_v44 }
 0x1a6   :  { %v196_v33 = vpop.f32.mrf.mxu1 }
 0x1a7   :  { %v197_v34 = vadd.f32 %v441_v32, %v196_v33 }
 0x1a8   :  { %v523_v35 = vpop.f32.mrf.mxu1 }
 0x1a9   :  { %596 = vtanh.f32 %v197_v34 }
 0x1aa   :  { %v199_v36 = vpop.f32.mrf.mxu1 }
 0x1ac   :  { %v524_v37 = vpop.f32.mrf.mxu1 }
 0x1b6   :  { %v597_v38 = vpop.eup %596 }
 0x1b7   :  { %v222_v39 = vpack.c.bf16 %v597_v38, %v597_v38 }
 0x1b9   :  { %542 = vmatmul.mubr.bf16.vlgmr.msra.gmra.mxu0 %v222_v39 }
 0x279   :  { %v311_v46 = vpop.f32.mrf.mxu0 }
 0x27a   :  { %v312_v47 = vadd.f32 %v451_v45, %v311_v46 }
 0x27b   :  { %v543_v48 = vpop.f32.mrf.mxu0 }
 0x27c   :  { %598 = vtanh.f32 %v312_v47 }
 0x27d   :  { %v314_v49 = vpop.f32.mrf.mxu0 }
 0x27f   :  { %v544_v50 = vpop.f32.mrf.mxu0 }
 0x289   :  { %v599_v51 = vpop.eup %598 }
 0x28a   :  { %v337_v52 = vpack.c.bf16 %v599_v51, %v599_v51 }
 0x28c   :  { %562 = vmatmul.mubr.bf16.vlgmr.msra.gmra.mxu1 %v337_v52 }
 0x34c   :  { %v426_v54 = vpop.f32.mrf.mxu1 }
 0x34d   :  { %v427_v55 = vadd.f32 %v461_v53, %v426_v54 }
 0x34e   :  { %v563_v56 = vpop.f32.mrf.mxu1 }
 0x34f   :  { %432 = vst [vmem:[%s704_s3] sm:$0xff] %v427_v55 }
 0x350   :  { %v429_v57 = vpop.f32.mrf.mxu1 }
 0x352   :  { %v564_v58 = vpop.f32.mrf.mxu1 }
 0x353   :  { %437 = vsyncpa [#allocation3], 1 }

</bundles_post_ra>
